<compile_context>
chip_gen: v7x
topology: tpu7x:2x2x1
jax: 0.10.0
libtpu: 0.0.40
codegen_flags: <defaults>
</compile_context>

<pallas_src>
import jax
import jax.numpy as jnp
from jax.experimental import pallas as pl
from jax.experimental.pallas import tpu as pltpu

_LANE = 128          # vreg lane width
_SUBLANE = 8         # f32 sublane height
_TBC_MAX = 256       # max rows (b*c) per tile
_THW_MAX_F32 = 4096  # max spatial elems per tile for 4-byte inputs (4 MiB buf)
_N_ACC = 4           # independent partial accumulators in the lane-group fold


def _round_up(x: int, m: int) -> int:
    return (x + m - 1) // m * m


def _cdiv(a: int, b: int) -> int:
    return (a + b - 1) // b


def _fold_chunk(gen_ref, gt_ref, tbc: int, n_full: int, partial_lanes: int):
    """Fold (gen - gt) of the current (tbc, thw) chunk into a (tbc, 128) f32
    partial, reading one 128-lane slice at a time (fused subtract, no big
    temporary).  `n_full` slices are fully valid; optionally one extra ragged
    slice with `partial_lanes` valid lanes is masked with a static lane mask.
    Uses up to _N_ACC independent accumulators, tree-combined at the end."""

    def load_diff(j):
        g = gen_ref[:, pl.ds(j * _LANE, _LANE)].astype(jnp.float32)
        t = gt_ref[:, pl.ds(j * _LANE, _LANE)].astype(jnp.float32)
        return g - t

    partials = []
    for j in range(n_full):
        d = load_diff(j)
        slot = j % _N_ACC
        if slot < len(partials):
            partials[slot] = partials[slot] + d
        else:
            partials.append(d)

    if partial_lanes:
        d = load_diff(n_full)
        # Static-constant lane mask (hw is a trace-time constant).
        mask = jax.lax.broadcasted_iota(jnp.int32, (tbc, _LANE), 1) < partial_lanes
        d = jnp.where(mask, d, 0.0)   # select, so OOB garbage/NaN cannot leak
        if partials:
            partials[0] = partials[0] + d
        else:
            partials.append(d)

    # Tree-combine the independent partials.
    while len(partials) > 1:
        nxt = []
        for a in range(0, len(partials), 2):
            if a + 1 < len(partials):
                nxt.append(partials[a] + partials[a + 1])
            else:
                nxt.append(partials[a])
        partials = nxt
    return partials[0]


def _make_kernel(bc: int, hw: int, tbc: int, thw: int, num_hw: int):
    inv_hw = 1.0 / float(hw)
    n_groups = thw // _LANE
    last_valid = hw - (num_hw - 1) * thw        # valid cols in last HW tile
    n_full_last = last_valid // _LANE
    part_last = last_valid % _LANE
    hw_ragged = (hw % thw) != 0
    bc_ragged = (bc % tbc) != 0

    def kernel(gen_ref, gt_ref, out_ref, acc_ref):
        k = pl.program_id(1)

        @pl.when(k == 0)
        def _():
            acc_ref[...] = jnp.zeros_like(acc_ref)

        if not hw_ragged:
            acc_ref[...] += _fold_chunk(gen_ref, gt_ref, tbc, n_groups, 0)
        else:
            @pl.when(k < num_hw - 1)
            def _():
                acc_ref[...] += _fold_chunk(gen_ref, gt_ref, tbc, n_groups, 0)

            @pl.when(k == num_hw - 1)
            def _():
                acc_ref[...] += _fold_chunk(
                    gen_ref, gt_ref, tbc, n_full_last, part_last)

        @pl.when(k == num_hw - 1)
        def _():
            # Per-row mean difference and its square (single XLU reduce here).
            row_sum = jnp.sum(acc_ref[...], axis=-1, keepdims=True)   # (tbc,1)
            row_diff = row_sum * inv_hw
            sq = jnp.broadcast_to(row_diff * row_diff, (tbc, _LANE))
            if bc_ragged:
                i = pl.program_id(0)
                rows = i * tbc + jax.lax.broadcasted_iota(
                    jnp.int32, (tbc, _LANE), 0)
                sq = jnp.where(rows < bc, sq, 0.0)   # zero padded rows exactly
            out_ref[...] = sq.astype(jnp.float32)

    return kernel


@jax.jit
def mean_loss(generated: jax.Array, gt: jax.Array) -> jax.Array:
    """generated, gt: (B, C, H, W). Returns scalar f32 loss."""
    assert generated.shape == gt.shape
    b, c, h, w = generated.shape
    bc, hw = b * c, h * w

    gen2d = generated.reshape(bc, hw)
    gt2d = gt.reshape(bc, hw)

    # Lane-dense last dim; larger chunks for narrow dtypes (halved HBM bytes).
    itemsize = jnp.dtype(generated.dtype).itemsize
    thw_max = _THW_MAX_F32 * (2 if itemsize <= 2 else 1)
    thw = min(thw_max, _round_up(hw, _LANE))

    # Sublane-aligned rows; guarantee >= 2 BC tiles (when possible) so the
    # "parallel" axis can shard across v7x's two TensorCores.
    bc_aligned = _round_up(bc, _SUBLANE)
    tbc = min(_TBC_MAX, bc_aligned)
    if bc_aligned > _SUBLANE:
        tbc = min(tbc, max(_SUBLANE, _round_up(_cdiv(bc_aligned, 2), _SUBLANE)))

    num_bc = _cdiv(bc, tbc)
    num_hw = _cdiv(hw, thw)
    bc_p = num_bc * tbc      # output rows (padded rows written as exact zeros)

    kernel = _make_kernel(bc, hw, tbc, thw, num_hw)

    out = pl.pallas_call(
        kernel,
        out_shape=jax.ShapeDtypeStruct((bc_p, _LANE), jnp.float32),
        grid_spec=pltpu.PrefetchScalarGridSpec(
            num_scalar_prefetch=0,
            grid=(num_bc, num_hw),
            in_specs=[
                pl.BlockSpec((tbc, thw), lambda i, k: (i, k)),
                pl.BlockSpec((tbc, thw), lambda i, k: (i, k)),
            ],
            out_specs=pl.BlockSpec((tbc, _LANE), lambda i, k: (i, 0)),
            scratch_shapes=[pltpu.VMEM((tbc, _LANE), jnp.float32)],
        ),
        compiler_params=pltpu.CompilerParams(
            dimension_semantics=("parallel", "arbitrary"),
            vmem_limit_bytes=32 * 1024 * 1024,
        ),
    )(gen2d, gt2d)

    # Tiny epilogue in plain JAX (padded rows are exactly 0).
    return jnp.sum(out[:, 0]) * (1.0 / bc)


if __name__ == "__main__":
    key = jax.random.PRNGKey(0)
    k1, k2 = jax.random.split(key)

    B, C, H, W = 2, 4, 16, 16
    generated = jax.random.normal(k1, (B, C, H, W), dtype=jnp.float32)
    gt = jax.random.normal(k2, (B, C, H, W), dtype=jnp.float32)

    loss = mean_loss(generated, gt)
    jax.block_until_ready(loss)

    # Pure-JAX reference check.
    mean_gen = generated.mean(axis=(-1, -2))
    mean_gt = gt.mean(axis=(-1, -2))
    ref = jnp.mean((mean_gen - mean_gt) ** 2)
    assert jnp.allclose(loss, ref, atol=1e-6, rtol=1e-5), (loss, ref)

    print("KERNEL_OK")
</pallas_src>

<mosaic_0001>
module attributes {stable_mosaic.version = 11 : i64} {
  func.func @kernel(%arg0: i32, %arg1: i32, %arg2: memref<8x256xf32, #tpu.memory_space<vmem>>, %arg3: memref<8x256xf32, #tpu.memory_space<vmem>>, %arg4: memref<8x128xf32, #tpu.memory_space<vmem>>, %arg5: memref<8x128xf32, #tpu.memory_space<vmem>>) attributes {dimension_semantics = [#tpu.dimension_semantics<parallel>, #tpu.dimension_semantics<arbitrary>], iteration_bounds = array<i64: 1, 1>, scalar_prefetch = 0 : i64, scratch_operands = 1 : i64, tpu.core_type = #tpu.core_type<tc>, window_params = [{transform_indices = @transform_0, window_bounds = array<i64: 8, 256>}, {transform_indices = @transform_1, window_bounds = array<i64: 8, 256>}, {transform_indices = @transform_2, window_bounds = array<i64: 8, 128>}]} {
    %c0_i32 = arith.constant 0 : i32
    %0 = arith.cmpi eq, %arg1, %c0_i32 : i32
    %1 = arith.extui %0 : i1 to i32
    %c0_i32_0 = arith.constant 0 : i32
    %2 = arith.cmpi ne, %1, %c0_i32_0 : i32
    scf.if %2 {
      %cst = arith.constant 0.000000e+00 : f32
      %16 = vector.broadcast %cst : f32 to vector<8x128xf32>
      %c0_13 = arith.constant 0 : index
      %c0_14 = arith.constant 0 : index
      %17 = vector.load %arg5[%c0_13, %c0_14] : memref<8x128xf32, #tpu.memory_space<vmem>>, vector<8x128xf32>
      tpu.vector_store %arg5[%c0_13, %c0_14], %16 {strides = array<i32>} : memref<8x128xf32, #tpu.memory_space<vmem>>, vector<8x128xf32>,
    } else {
    }
    %c0 = arith.constant 0 : index
    %c0_1 = arith.constant 0 : index
    %3 = vector.load %arg5[%c0, %c0_1] : memref<8x128xf32, #tpu.memory_space<vmem>>, vector<8x128xf32>
    %c0_2 = arith.constant 0 : index
    %c0_3 = arith.constant 0 : index
    %4 = vector.load %arg2[%c0_2, %c0_3] : memref<8x256xf32, #tpu.memory_space<vmem>>, vector<8x128xf32>
    %c0_4 = arith.constant 0 : index
    %c0_5 = arith.constant 0 : index
    %5 = vector.load %arg3[%c0_4, %c0_5] : memref<8x256xf32, #tpu.memory_space<vmem>>, vector<8x128xf32>
    %6 = arith.subf %4, %5 : vector<8x128xf32>
    %c0_6 = arith.constant 0 : index
    %c128 = arith.constant 128 : index
    %7 = vector.load %arg2[%c0_6, %c128] : memref<8x256xf32, #tpu.memory_space<vmem>>, vector<8x128xf32>
    %c0_7 = arith.constant 0 : index
    %c128_8 = arith.constant 128 : index
    %8 = vector.load %arg3[%c0_7, %c128_8] : memref<8x256xf32, #tpu.memory_space<vmem>>, vector<8x128xf32>
    %9 = arith.subf %7, %8 : vector<8x128xf32>
    %10 = arith.addf %6, %9 : vector<8x128xf32>
    %11 = arith.addf %3, %10 : vector<8x128xf32>
    %c0_9 = arith.constant 0 : index
    %c0_10 = arith.constant 0 : index
    %12 = vector.load %arg5[%c0_9, %c0_10] : memref<8x128xf32, #tpu.memory_space<vmem>>, vector<8x128xf32>
    tpu.vector_store %arg5[%c0_9, %c0_10], %11 {strides = array<i32>} : memref<8x128xf32, #tpu.memory_space<vmem>>, vector<8x128xf32>,
    %c0_i32_11 = arith.constant 0 : i32
    %13 = arith.cmpi eq, %arg1, %c0_i32_11 : i32
    %14 = arith.extui %13 : i1 to i32
    %c0_i32_12 = arith.constant 0 : i32
    %15 = arith.cmpi ne, %14, %c0_i32_12 : i32
    scf.if %15 {
      %c0_13 = arith.constant 0 : index
      %c0_14 = arith.constant 0 : index
      %16 = vector.load %arg5[%c0_13, %c0_14] : memref<8x128xf32, #tpu.memory_space<vmem>>, vector<8x128xf32>
      %cst = arith.constant dense<0.000000e+00> : vector<8xf32>
      %17 = vector.multi_reduction <add>, %16, %cst [1] : vector<8x128xf32> to vector<8xf32>
      %18 = vector.shape_cast %17 : vector<8xf32> to vector<8x1xf32>
      %cst_15 = arith.constant 3.906250e-03 : f32
      %19 = vector.broadcast %cst_15 : f32 to vector<8x1xf32>
      %20 = arith.mulf %18, %19 : vector<8x1xf32>
      %21 = arith.mulf %20, %20 : vector<8x1xf32>
      %22 = vector.shape_cast %21 : vector<8x1xf32> to vector<8x1xf32>
      %23 = vector.broadcast %22 : vector<8x1xf32> to vector<8x128xf32>
      %c0_16 = arith.constant 0 : index
      %c0_17 = arith.constant 0 : index
      %24 = vector.load %arg4[%c0_16, %c0_17] : memref<8x128xf32, #tpu.memory_space<vmem>>, vector<8x128xf32>
      tpu.vector_store %arg4[%c0_16, %c0_17], %23 {strides = array<i32>} : memref<8x128xf32, #tpu.memory_space<vmem>>, vector<8x128xf32>,
    } else {
    }
    return
  }
  func.func @transform_0(%arg0: i32, %arg1: i32) -> (i32, i32) {
    %c0_i32 = arith.constant 0 : i32
    return %arg0, %arg1 : i32, i32
  }
  func.func @transform_1(%arg0: i32, %arg1: i32) -> (i32, i32) {
    %c0_i32 = arith.constant 0 : i32
    return %arg0, %arg1 : i32, i32
  }
  func.func @transform_2(%arg0: i32, %arg1: i32) -> (i32, i32) {
    %c0_i32 = arith.constant 0 : i32
    %c0_i32_0 = arith.constant 0 : i32
    return %arg0, %c0_i32 : i32, i32
  }
}

</mosaic_0001>

<bundles_post_ra>
// kernel: mean_loss.1
= control target key start
LH: loop header
LB: loop body
LE: loop exit
PB: predicated region body
PF: predicated region fallthrough
CT: control target
= control target key end

     0   :  { %s69_s0 = inlined_call_operand.vmem [shape: f32[8,256], index: 0, kind: input, shape index: {}]   ;;  %s70_s1 = inlined_call_operand.vmem [shape: f32[8,256], index: 1, kind: input, shape index: {}]   ;;  %s71_s2 = inlined_call_operand.vmem [shape: f32[8,128], index: 2, kind: output, shape index: {}]  }
   0x1   :  { %v17_v0 = vld [vmem:[%s69_s0] sm:$0xff]  ;;  %v20_v2 = vld [vmem:[%s69_s0 + $0x8] sm:$0xff] }
   0x2   :  { %v18_v1 = vld [vmem:[%s70_s1] sm:$0xff]  ;;  %v21_v4 = vld [vmem:[%s70_s1 + $0x8] sm:$0xff] }
   0x3   :  { %v19_v3 = vsub.f32 %v17_v0, %v18_v1  ;;  %v22_v5 = vsub.f32 %v20_v2, %v21_v4 }
   0x5   :  { %v23_v6 = vadd.f32 %v22_v5, %v19_v3 }
   0x7   :  { %30 = vadd.xlane.f32.xlu0 %v23_v6 }
  0x94   :  { %v31_v7 = vpop.xlane.xlu0 %30 }
  0x95   :  { %v32_v8 = vmul.f32 0.00390625, %v31_v7 }
  0x97   :  { %v33_v9 = vmul.f32 %v32_v8, %v32_v8 }
  0x99   :  { %34 = vst [vmem:[%s71_s2] sm:$0xff] %v33_v9 }

</bundles_post_ra>
